<compile_context>
chip_gen: v6e
topology: v6e:2x2x1
jax: 0.10.0
libtpu: 0.0.40
codegen_flags: <defaults>
</compile_context>

<pallas_src>
import math

import jax
import jax.numpy as jnp
from jax.experimental import pallas as pl
from jax.experimental.pallas import tpu as pltpu


def _round_up(v, m):
    return ((v + m - 1) // m) * m


def _sublane_multiple(dtype):
    """Sublane packing granularity for the second-to-last dim of a block."""
    bits = jnp.dtype(dtype).itemsize * 8
    return max(8, (32 // bits) * 8)  # f32 -> 8, bf16 -> 16, int8/fp8 -> 32


def _pad2d(a, rows, cols):
    r, c = a.shape
    if r == rows and c == cols:
        return a
    return jnp.zeros((rows, cols), a.dtype).at[:r, :c].set(a)


def _gin_kernel(eps_ref,          # (1,)        SMEM scalar
                sc_ref,           # (tm, tk)    sc tile           (compute dtype)
                xk_ref,           # (tk, F)     x K-tile          (compute dtype)
                xr_ref,           # (tm, F)     x row-tile        (f32)
                diag_ref,         # (tm, 1)     diag(sc) row-tile (f32)
                w1_ref, b1_ref,   # (F, H), (1, H)                (f32)
                w2_ref, b2_ref,   # (H, C), (1, C)                (f32)
                out_ref,          # (tm, C)                       (f32)
                acc_ref):         # VMEM scratch (tm, F) f32
    k = pl.program_id(1)
    nk = pl.num_programs(1)

    @pl.when(k == 0)
    def _init():
        acc_ref[...] = jnp.zeros_like(acc_ref)

    # Aggregation: pure MXU + DMA inner loop, accumulate in f32.
    acc_ref[...] += jnp.dot(sc_ref[...], xk_ref[...],
                            preferred_element_type=jnp.float32)

    @pl.when(k == nk - 1)
    def _epilogue():
        eps = eps_ref[0]
        # sc' differs from sc only on the diagonal:
        #   sc'[i,i] = eps*sc[i,i]  =>  delta row i = (eps-1)*sc[i,i]*x[i]
        # diag / xr are kept f32 so the correction matches the accumulator.
        h = acc_ref[...] + (eps - 1.0) * diag_ref[...] * xr_ref[...]

        # Linear 1 + ReLU (bias broadcast only here, outside the K loop).
        h = jnp.dot(h, w1_ref[...], preferred_element_type=jnp.float32) + b1_ref[...]
        h = jnp.maximum(h, 0.0)

        # Dropout: eval mode (training=False) -> identity.
        # TODO(synk): training-mode dropout would need pltpu.prng_* + a seed input.

        # Linear 2
        logits = jnp.dot(h, w2_ref[...], preferred_element_type=jnp.float32) + b2_ref[...]

        # Numerically stable log_softmax; single writeback per row tile.
        m = jnp.max(logits, axis=-1, keepdims=True)
        z = logits - m
        lse = jnp.log(jnp.sum(jnp.exp(z), axis=-1, keepdims=True))
        out_ref[...] = (z - lse).astype(out_ref.dtype)


def graphsn_gin_forward(x, sc, eps, w1, b1, w2, b2, *,
                        tm=512, tk=2048, compute_dtype=jnp.bfloat16):
    """x: (N, nfeat); sc: (N, N); w1: (nfeat, nhid); w2: (nhid, nclass).

    compute_dtype: dtype in which sc and the x K-tiles are streamed to the
    MXU.  bf16 (default) halves the dominant HBM stream; the accumulator,
    diagonal correction, MLP and log_softmax always stay f32.  Pass
    jnp.float32 for bit-faithful aggregation.
    """
    n, nfeat = x.shape
    nhid = w1.shape[1]
    nclass = w2.shape[1]

    f32 = jnp.float32
    x = x.astype(f32)
    sc = sc.astype(f32)

    # ---- tile selection --------------------------------------------------
    sub = _sublane_multiple(compute_dtype)
    # Row tiles: multiple of the streaming dtype's sublane packing; cap so the
    # "parallel" row axis has >= 2 tiles (v7x megacore: 2 TensorCores/chip).
    tm = min(tm, _round_up(n, sub))
    tm = min(tm, max(sub, _round_up(pl.cdiv(n, 2), sub)))
    # K tiles: lane axis of the sc block -> multiple of 128.
    tk = min(tk, _round_up(n, 128))

    n_rows = _round_up(n, tm)   # padded row count (M axis of sc / out)
    n_cols = _round_up(n, tk)   # padded column count (reduction axis)

    diag = jnp.diagonal(sc).reshape(n, 1)

    # Zero padding: padded sc columns / x rows contribute 0 to the reduction;
    # padded output rows are sliced off at the end.
    sc_p = _pad2d(sc, n_rows, n_cols).astype(compute_dtype)
    xk_p = _pad2d(x, n_cols, nfeat).astype(compute_dtype)
    xr_p = _pad2d(x, n_rows, nfeat)            # f32: diag-correction operand
    dg_p = _pad2d(diag, n_rows, 1)             # f32

    eps_arr = jnp.asarray(eps, f32).reshape((1,))
    b1_2d = b1.reshape(1, nhid).astype(f32)
    b2_2d = b2.reshape(1, nclass).astype(f32)
    w1 = w1.astype(f32)
    w2 = w2.astype(f32)

    grid = (n_rows // tm, n_cols // tk)

    # ---- VMEM budget (double-buffered working set, generation-safe) -------
    cbytes = jnp.dtype(compute_dtype).itemsize
    lane = 128
    need = (2 * tm * tk * cbytes                           # sc (double buffer)
            + 2 * tk * _round_up(nfeat, lane) * cbytes     # x K-tiles
            + 2 * tm * _round_up(nfeat, lane) * 4          # x row-tiles (f32)
            + 2 * tm * lane * 4                            # diag(sc)
            + tm * _round_up(nfeat, lane) * 4              # accumulator scratch
            + 2 * tm * _round_up(nclass, lane) * 4         # output tile
            + 2 * 4 * (_round_up(nfeat, 8) * _round_up(nhid, lane)
                       + _round_up(nhid, 8) * _round_up(nclass, lane)
                       + 2 * lane))                        # weights + biases
    vmem_limit = int(min(48 * 1024 * 1024,                 # safe on v7x (64 MiB)
                         max(16 * 1024 * 1024, 2 * need)))

    out = pl.pallas_call(
        _gin_kernel,
        out_shape=jax.ShapeDtypeStruct((n_rows, nclass), f32),
        grid=grid,
        in_specs=[
            pl.BlockSpec(memory_space=pltpu.MemorySpace.SMEM),        # eps scalar
            pl.BlockSpec((tm, tk), lambda i, k: (i, k)),              # sc tile
            pl.BlockSpec((tk, nfeat), lambda i, k: (k, 0)),           # x (K tiles)
            pl.BlockSpec((tm, nfeat), lambda i, k: (i, 0)),           # x (row tiles)
            pl.BlockSpec((tm, 1), lambda i, k: (i, 0)),               # diag(sc)
            pl.BlockSpec((nfeat, nhid), lambda i, k: (0, 0)),         # w1
            pl.BlockSpec((1, nhid), lambda i, k: (0, 0)),             # b1
            pl.BlockSpec((nhid, nclass), lambda i, k: (0, 0)),        # w2
            pl.BlockSpec((1, nclass), lambda i, k: (0, 0)),           # b2
        ],
        out_specs=pl.BlockSpec((tm, nclass), lambda i, k: (i, 0)),
        scratch_shapes=[pltpu.VMEM((tm, nfeat), jnp.float32)],
        compiler_params=pltpu.CompilerParams(
            dimension_semantics=("parallel", "arbitrary"),
            vmem_limit_bytes=vmem_limit,
        ),
    )(eps_arr, sc_p, xk_p, xr_p, dg_p, w1, b1_2d, w2, b2_2d)

    return out[:n]


def _reference(x, sc, eps, w1, b1, w2, b2, agg_dtype=jnp.float32):
    """Pure-JAX reference mirroring the PyTorch forward (eval mode).

    agg_dtype: dtype of the sc'@x aggregation operands (f32 reference, or
    bf16 to validate the low-precision streaming path).
    """
    v = eps * jnp.diag(sc)
    mask = jnp.diag(jnp.ones_like(v))
    sc_mod = mask * jnp.diag(v) + (1.0 - mask) * sc
    h = jnp.dot(sc_mod.astype(agg_dtype), x.astype(agg_dtype),
                preferred_element_type=jnp.float32)
    h = jax.nn.relu(h @ w1 + b1)
    logits = h @ w2 + b2
    return jax.nn.log_softmax(logits, axis=-1)


if __name__ == "__main__":
    # Small shapes consistent with the module: N nodes, nfeat -> nhid -> nclass.
    # N=200 exercises multiple row tiles (megacore cap), zero padding of both
    # grid axes, and both the f32 and bf16 streaming paths.
    N, NFEAT, NHID, NCLASS = 200, 16, 32, 8
    DROPOUT = 0.5  # unused at eval time

    key = jax.random.PRNGKey(0)
    k_x, k_sc, k_w1, k_b1, k_w2, k_b2 = jax.random.split(key, 6)

    x = jax.random.normal(k_x, (N, NFEAT), jnp.float32)
    sc = jax.random.uniform(k_sc, (N, N), jnp.float32)

    # PyTorch Linear default init: U(-1/sqrt(fan_in), +1/sqrt(fan_in)).
    bound1 = 1.0 / math.sqrt(NFEAT)
    w1 = jax.random.uniform(k_w1, (NFEAT, NHID), jnp.float32, -bound1, bound1)
    b1 = jax.random.uniform(k_b1, (NHID,), jnp.float32, -bound1, bound1)
    bound2 = 1.0 / math.sqrt(NHID)
    w2 = jax.random.uniform(k_w2, (NHID, NCLASS), jnp.float32, -bound2, bound2)
    b2 = jax.random.uniform(k_b2, (NCLASS,), jnp.float32, -bound2, bound2)
    eps = 0.44 / math.sqrt(1.0)  # nn.init.constant_(self.eps, 0.44/sqrt(1))

    # 1) Exact-semantics check: f32 streaming path vs f32 reference.
    out_f32 = graphsn_gin_forward(x, sc, eps, w1, b1, w2, b2,
                                  compute_dtype=jnp.float32)
    out_f32 = jax.block_until_ready(out_f32)
    ref_f32 = _reference(x, sc, eps, w1, b1, w2, b2)
    assert out_f32.shape == (N, NCLASS)
    assert jnp.allclose(out_f32, ref_f32, atol=1e-4, rtol=1e-4), \
        "f32 path mismatch vs reference"

    # 2) Default fast path: bf16 streaming of sc/x, f32 accumulation.
    #    Compared against a reference whose aggregation is also bf16 (the
    #    remaining difference is only the diag-correction rounding).
    out_bf16 = graphsn_gin_forward(x, sc, eps, w1, b1, w2, b2)
    out_bf16 = jax.block_until_ready(out_bf16)
    ref_bf16 = _reference(x, sc, eps, w1, b1, w2, b2, agg_dtype=jnp.bfloat16)
    assert out_bf16.shape == (N, NCLASS)
    assert jnp.allclose(out_bf16, ref_bf16, atol=2e-2, rtol=2e-2), \
        "bf16 path mismatch vs bf16 reference"

    print("KERNEL_OK")
</pallas_src>

<mosaic_0001>
module attributes {stable_mosaic.version = 11 : i64} {
  func.func @_gin_kernel(%arg0: i32, %arg1: i32, %arg2: memref<1xf32, #tpu.memory_space<smem>>, %arg3: memref<104x256xf32, #tpu.memory_space<vmem>>, %arg4: memref<256x16xf32, #tpu.memory_space<vmem>>, %arg5: memref<104x16xf32, #tpu.memory_space<vmem>>, %arg6: memref<104x1xf32, #tpu.memory_space<vmem>>, %arg7: memref<16x32xf32, #tpu.memory_space<vmem>>, %arg8: memref<1x32xf32, #tpu.memory_space<vmem>>, %arg9: memref<32x8xf32, #tpu.memory_space<vmem>>, %arg10: memref<1x8xf32, #tpu.memory_space<vmem>>, %arg11: memref<104x8xf32, #tpu.memory_space<vmem>>, %arg12: memref<104x16xf32, #tpu.memory_space<vmem>>) attributes {dimension_semantics = [#tpu.dimension_semantics<parallel>, #tpu.dimension_semantics<arbitrary>], iteration_bounds = array<i64: 2, 1>, scalar_prefetch = 0 : i64, scratch_operands = 1 : i64, tpu.core_type = #tpu.core_type<tc>, window_params = [{transform_indices = @transform_0, window_bounds = array<i64: 1>}, {transform_indices = @transform_1, window_bounds = array<i64: 104, 256>}, {transform_indices = @transform_2, window_bounds = array<i64: 256, 16>}, {transform_indices = @transform_3, window_bounds = array<i64: 104, 16>}, {transform_indices = @transform_4, window_bounds = array<i64: 104, 1>}, {pipeline_mode = #tpu.pipeline_mode<synchronous>, transform_indices = @transform_5, window_bounds = array<i64: 16, 32>}, {pipeline_mode = #tpu.pipeline_mode<synchronous>, transform_indices = @transform_6, window_bounds = array<i64: 1, 32>}, {pipeline_mode = #tpu.pipeline_mode<synchronous>, transform_indices = @transform_7, window_bounds = array<i64: 32, 8>}, {pipeline_mode = #tpu.pipeline_mode<synchronous>, transform_indices = @transform_8, window_bounds = array<i64: 1, 8>}, {transform_indices = @transform_9, window_bounds = array<i64: 104, 8>}]} {
    %c0_i32 = arith.constant 0 : i32
    %0 = arith.cmpi eq, %arg1, %c0_i32 : i32
    %1 = arith.extui %0 : i1 to i32
    %c0_i32_0 = arith.constant 0 : i32
    %2 = arith.cmpi ne, %1, %c0_i32_0 : i32
    scf.if %2 {
      %cst_10 = arith.constant 0.000000e+00 : f32
      %12 = vector.broadcast %cst_10 : f32 to vector<104x16xf32>
      %c0_11 = arith.constant 0 : index
      %c0_12 = arith.constant 0 : index
      %13 = vector.load %arg12[%c0_11, %c0_12] : memref<104x16xf32, #tpu.memory_space<vmem>>, vector<104x16xf32>
      tpu.vector_store %arg12[%c0_11, %c0_12], %12 {strides = array<i32>} : memref<104x16xf32, #tpu.memory_space<vmem>>, vector<104x16xf32>,
    } else {
    }
    %c0 = arith.constant 0 : index
    %c0_1 = arith.constant 0 : index
    %3 = vector.load %arg12[%c0, %c0_1] : memref<104x16xf32, #tpu.memory_space<vmem>>, vector<104x16xf32>
    %c0_2 = arith.constant 0 : index
    %c0_3 = arith.constant 0 : index
    %4 = vector.load %arg3[%c0_2, %c0_3] : memref<104x256xf32, #tpu.memory_space<vmem>>, vector<104x256xf32>
    %c0_4 = arith.constant 0 : index
    %c0_5 = arith.constant 0 : index
    %5 = vector.load %arg4[%c0_4, %c0_5] : memref<256x16xf32, #tpu.memory_space<vmem>>, vector<256x16xf32>
    %cst = arith.constant dense<0.000000e+00> : vector<104x16xf32>
    %6 = tpu.matmul %4, %5, %cst {dimension_numbers = #tpu.dot_dimension_numbers<[1], [0], [0], [1], [0, 0, 1, 1], [], []>} : vector<104x256xf32>, vector<256x16xf32>, vector<104x16xf32> -> vector<104x16xf32>
    %7 = arith.addf %3, %6 : vector<104x16xf32>
    %c0_6 = arith.constant 0 : index
    %c0_7 = arith.constant 0 : index
    %8 = vector.load %arg12[%c0_6, %c0_7] : memref<104x16xf32, #tpu.memory_space<vmem>>, vector<104x16xf32>
    tpu.vector_store %arg12[%c0_6, %c0_7], %7 {strides = array<i32>} : memref<104x16xf32, #tpu.memory_space<vmem>>, vector<104x16xf32>,
    %c0_i32_8 = arith.constant 0 : i32
    %9 = arith.cmpi eq, %arg1, %c0_i32_8 : i32
    %10 = arith.extui %9 : i1 to i32
    %c0_i32_9 = arith.constant 0 : i32
    %11 = arith.cmpi ne, %10, %c0_i32_9 : i32
    scf.if %11 {
      %c0_10 = arith.constant 0 : index
      %12 = memref.load %arg2[%c0_10] : memref<1xf32, #tpu.memory_space<smem>>
      %c0_11 = arith.constant 0 : index
      %c0_12 = arith.constant 0 : index
      %13 = vector.load %arg12[%c0_11, %c0_12] : memref<104x16xf32, #tpu.memory_space<vmem>>, vector<104x16xf32>
      %cst_13 = arith.constant 1.000000e+00 : f32
      %14 = arith.subf %12, %cst_13 : f32
      %c0_14 = arith.constant 0 : index
      %c0_15 = arith.constant 0 : index
      %15 = vector.load %arg6[%c0_14, %c0_15] : memref<104x1xf32, #tpu.memory_space<vmem>>, vector<104x1xf32>
      %16 = vector.broadcast %14 : f32 to vector<104x1xf32>
      %17 = arith.mulf %16, %15 : vector<104x1xf32>
      %c0_16 = arith.constant 0 : index
      %c0_17 = arith.constant 0 : index
      %18 = vector.load %arg5[%c0_16, %c0_17] : memref<104x16xf32, #tpu.memory_space<vmem>>, vector<104x16xf32>
      %19 = vector.broadcast %17 : vector<104x1xf32> to vector<104x16xf32>
      %20 = arith.mulf %19, %18 : vector<104x16xf32>
      %21 = arith.addf %13, %20 : vector<104x16xf32>
      %c0_18 = arith.constant 0 : index
      %c0_19 = arith.constant 0 : index
      %22 = vector.load %arg7[%c0_18, %c0_19] : memref<16x32xf32, #tpu.memory_space<vmem>>, vector<16x32xf32>
      %cst_20 = arith.constant dense<0.000000e+00> : vector<104x32xf32>
      %23 = tpu.matmul %21, %22, %cst_20 {dimension_numbers = #tpu.dot_dimension_numbers<[1], [0], [0], [1], [0, 0, 1, 1], [], []>} : vector<104x16xf32>, vector<16x32xf32>, vector<104x32xf32> -> vector<104x32xf32>
      %c0_21 = arith.constant 0 : index
      %c0_22 = arith.constant 0 : index
      %24 = vector.load %arg8[%c0_21, %c0_22] : memref<1x32xf32, #tpu.memory_space<vmem>>, vector<1x32xf32>
      %25 = vector.broadcast %24 : vector<1x32xf32> to vector<104x32xf32>
      %26 = arith.addf %23, %25 : vector<104x32xf32>
      %cst_23 = arith.constant 0.000000e+00 : f32
      %27 = vector.broadcast %cst_23 : f32 to vector<104x32xf32>
      %28 = arith.maximumf %26, %27 : vector<104x32xf32>
      %c0_24 = arith.constant 0 : index
      %c0_25 = arith.constant 0 : index
      %29 = vector.load %arg9[%c0_24, %c0_25] : memref<32x8xf32, #tpu.memory_space<vmem>>, vector<32x8xf32>
      %cst_26 = arith.constant dense<0.000000e+00> : vector<104x8xf32>
      %30 = tpu.matmul %28, %29, %cst_26 {dimension_numbers = #tpu.dot_dimension_numbers<[1], [0], [0], [1], [0, 0, 1, 1], [], []>} : vector<104x32xf32>, vector<32x8xf32>, vector<104x8xf32> -> vector<104x8xf32>
      %c0_27 = arith.constant 0 : index
      %c0_28 = arith.constant 0 : index
      %31 = vector.load %arg10[%c0_27, %c0_28] : memref<1x8xf32, #tpu.memory_space<vmem>>, vector<1x8xf32>
      %32 = vector.broadcast %31 : vector<1x8xf32> to vector<104x8xf32>
      %33 = arith.addf %30, %32 : vector<104x8xf32>
      %cst_29 = arith.constant dense<0xFF800000> : vector<104xf32>
      %34 = vector.multi_reduction <maximumf>, %33, %cst_29 [1] : vector<104x8xf32> to vector<104xf32>
      %35 = vector.shape_cast %34 : vector<104xf32> to vector<104x1xf32>
      %36 = vector.broadcast %35 : vector<104x1xf32> to vector<104x8xf32>
      %37 = arith.subf %33, %36 : vector<104x8xf32>
      %38 = math.exp %37 : vector<104x8xf32>
      %cst_30 = arith.constant dense<0.000000e+00> : vector<104xf32>
      %39 = vector.multi_reduction <add>, %38, %cst_30 [1] : vector<104x8xf32> to vector<104xf32>
      %40 = vector.shape_cast %39 : vector<104xf32> to vector<104x1xf32>
      %41 = math.log %40 : vector<104x1xf32>
      %42 = vector.broadcast %41 : vector<104x1xf32> to vector<104x8xf32>
      %43 = arith.subf %37, %42 : vector<104x8xf32>
      %c0_31 = arith.constant 0 : index
      %c0_32 = arith.constant 0 : index
      %44 = vector.load %arg11[%c0_31, %c0_32] : memref<104x8xf32, #tpu.memory_space<vmem>>, vector<104x8xf32>
      tpu.vector_store %arg11[%c0_31, %c0_32], %43 {strides = array<i32>} : memref<104x8xf32, #tpu.memory_space<vmem>>, vector<104x8xf32>,
    } else {
    }
    return
  }
  func.func @transform_0(%arg0: i32, %arg1: i32) -> i32 {
    %c0_i32 = arith.constant 0 : i32
    %c0_i32_0 = arith.constant 0 : i32
    return %c0_i32 : i32
  }
  func.func @transform_1(%arg0: i32, %arg1: i32) -> (i32, i32) {
    %c0_i32 = arith.constant 0 : i32
    return %arg0, %arg1 : i32, i32
  }
  func.func @transform_2(%arg0: i32, %arg1: i32) -> (i32, i32) {
    %c0_i32 = arith.constant 0 : i32
    %c0_i32_0 = arith.constant 0 : i32
    return %arg1, %c0_i32 : i32, i32
  }
  func.func @transform_3(%arg0: i32, %arg1: i32) -> (i32, i32) {
    %c0_i32 = arith.constant 0 : i32
    %c0_i32_0 = arith.constant 0 : i32
    return %arg0, %c0_i32 : i32, i32
  }
  func.func @transform_4(%arg0: i32, %arg1: i32) -> (i32, i32) {
    %c0_i32 = arith.constant 0 : i32
    %c0_i32_0 = arith.constant 0 : i32
    return %arg0, %c0_i32 : i32, i32
  }
  func.func @transform_5(%arg0: i32, %arg1: i32) -> (i32, i32) {
    %c0_i32 = arith.constant 0 : i32
    %c0_i32_0 = arith.constant 0 : i32
    %c0_i32_1 = arith.constant 0 : i32
    return %c0_i32, %c0_i32_0 : i32, i32
  }
  func.func @transform_6(%arg0: i32, %arg1: i32) -> (i32, i32) {
    %c0_i32 = arith.constant 0 : i32
    %c0_i32_0 = arith.constant 0 : i32
    %c0_i32_1 = arith.constant 0 : i32
    return %c0_i32, %c0_i32_0 : i32, i32
  }
  func.func @transform_7(%arg0: i32, %arg1: i32) -> (i32, i32) {
    %c0_i32 = arith.constant 0 : i32
    %c0_i32_0 = arith.constant 0 : i32
    %c0_i32_1 = arith.constant 0 : i32
    return %c0_i32, %c0_i32_0 : i32, i32
  }
  func.func @transform_8(%arg0: i32, %arg1: i32) -> (i32, i32) {
    %c0_i32 = arith.constant 0 : i32
    %c0_i32_0 = arith.constant 0 : i32
    %c0_i32_1 = arith.constant 0 : i32
    return %c0_i32, %c0_i32_0 : i32, i32
  }
  func.func @transform_9(%arg0: i32, %arg1: i32) -> (i32, i32) {
    %c0_i32 = arith.constant 0 : i32
    %c0_i32_0 = arith.constant 0 : i32
    return %arg0, %c0_i32 : i32, i32
  }
}

</mosaic_0001>

<bundles_post_ra>
// kernel: tpu_custom_call.1
= control target key start
LH: loop header
LB: loop body
LE: loop exit
PB: predicated region body
PF: predicated region fallthrough
CT: control target
= control target key end

     0   :  { %s1882_s11 = smov 0   ;;  %s1884_s12 = smov 0   ;;  %s2427_s0 = inlined_call_operand.<no memory space> [shape: f32[1], index: 0, kind: input, shape index: {}]   ;;  %s2428_s1 = inlined_call_operand.vmem [shape: f32[208,256], index: 1, kind: input, shape index: {}]   ;;  %s2429_s2 = inlined_call_operand.vmem [shape: f32[256,16], index: 2, kind: input, shape index: {}]   ;;  %s2430_s3 = inlined_call_operand.vmem [shape: f32[208,16], index: 3, kind: input, shape index: {}]   ;;  %s2431_s4 = inlined_call_operand.vmem [shape: f32[208,1], index: 4, kind: input, shape index: {}]   ;;  %s2432_s5 = inlined_call_operand.vmem [shape: f32[16,32], index: 5, kind: input, shape index: {}]   ;;  %s2433_s6 = inlined_call_operand.vmem [shape: f32[1,32], index: 6, kind: input, shape index: {}]   ;;  %s2434_s7 = inlined_call_operand.vmem [shape: f32[32,8], index: 7, kind: input, shape index: {}]   ;;  %s2435_s8 = inlined_call_operand.vmem [shape: f32[1,8], index: 8, kind: input, shape index: {}]   ;;  %s2436_s9 = inlined_call_operand.vmem [shape: f32[208,8], index: 9, kind: output, shape index: {}]  }
   0x1   :  { %14 = sst [smem:[#allocation3]] %s2427_s0  ;;  %s1886_s13 = smov 0  }
   0x2 LB: > { %s32_s0 = sadd.s32 1, %s1820_s12  ;;  %p1486_p0 = scmp.ge.s32.totalorder %s1824_s13, 1  ;;  %s1824_s13 = sphi %s1886_s13, %s20_s13   ;;  %s1820_s12 = sphi %s1884_s12, %s2438_s12   ;;  %s1816_s11 = sphi %s1882_s11, %s2437_s11  }
   0x3   : > { %p34_p1 = scmp.ge.s32.totalorder %s32_s0, 2  ;;  %p342_p2 = scmp.lt.s32.totalorder %s1824_s13, 3 }
   0x5   : > { %s2440_s0 = smov (%p34_p1, %s32_s0), 0  ;;  %p343_p3 = pnand %p1486_p0, %p342_p2 }
   0x6   : > { %s398_s20 = smul.u32 (!%p343_p3), 13, %s1816_s11  ;;  %s1925_s10 = sld [smem:[#allocation3]] (!%p343_p3) }
   0x7   : > { %346 = sbr.rel (%p343_p3) target bundleno = 1009 (0x3f1), region = 56 }
   0x8   : > { %p400_p4 = scmp.lt.s32.totalorder (!%p343_p3), %s398_s20, 25 }
   0xc   : > { %v522_v0 = vld [vmem:[%s2429_s2 + $0xf8] sm:$0xff]  ;;  %v521_v2 = vld [vmem:[%s2429_s2 + $0xf0] sm:$0xff]  ;;  %v1826_v4 = vmov 0   ;;  %v520_v5 = vld [vmem:[%s2429_s2 + $0xe8] sm:$0xff]  ;;  %v1827_v7 = vmov 0.0   ;;  %s2442_s20 = smov (!%p400_p4, %s398_s20), 25 }
   0xd   : > { %v506_v1 = vld [vmem:[%s2429_s2 + $0x78] sm:$0xff]  ;;  %1524 = vmatprep.subr.mxu0 %v522_v0  ;;  %v505_v3 = vld [vmem:[%s2429_s2 + $0x70] sm:$0xff]  ;;  %1748 = vset.pattern.permute.xlu0 %v1826_v4  ;;  %v504_v6 = vld [vmem:[%s2429_s2 + $0x68] sm:$0xff]  ;;  %s1523_s15 = sshll.u32 %s2442_s20, 4  ;;  %s1957_s16 = sshll.u32 %s2442_s20, 3  ;;  %vm438_vm0 = vcmask 130048  }
   0xe   : > { %1525 = vmatpush3.msra.mxu0 %v506_v1  ;;  %1749 = vset.pattern.permute.xlu1 %v1826_v4  ;;  %v519_v8 = vld [vmem:[%s2429_s2 + $0xe0] sm:$0xff]  ;;  %v518_v10 = vld [vmem:[%s2429_s2 + $0xd8] sm:$0xff]  ;;  %s1936_s21 = scalar_lea.vmem %s2428_s1, %s1523_s15  ;;  %v517_v12 = vld [vmem:[%s2429_s2 + $0xd0] sm:$0xff]  ;;  %s1492_s17 = sadd.f32 -1.0, %s1925_s10  ;;  %439 = vst.msk [vmem:[#allocation2] sm:$0xff] %vm438_vm0, %v1827_v7  ;;  %vm1828_vm1 = vmmov 0  }
   0xf   : > { %1526 = vmatprep.subr.mxu0 %v521_v2  ;;  %1717 = vmatprep.subr.mxu1 %v1827_v7  ;;  %v503_v9 = vld [vmem:[%s2429_s2 + $0x60] sm:$0xff]  ;;  %v502_v11 = vld [vmem:[%s2429_s2 + $0x58] sm:$0xff]  ;;  %v501_v13 = vld [vmem:[%s2429_s2 + $0x50] sm:$0xff]  ;;  %s1973_s27 = scalar_lea.vmem %s2431_s4, %s1957_s16  ;;  %440 = vst.msk [vmem:[#allocation2 + $0x8] sm:$0xff] %vm438_vm0, %v1827_v7  ;;  %s2111_s26 = scalar_lea.vmem %s2430_s3, %s1957_s16  ;;  %vm1031_vm2 = vcmask 261120   ;;  %vm1201_vm3 = vcmask 64512  }
  0x10   : > { %1527 = vmatpush3.msra.mxu0 %v505_v3  ;;  %v516_v14 = vld [vmem:[%s2429_s2 + $0xc8] sm:$0xff]  ;;  %v515_v17 = vld [vmem:[%s2429_s2 + $0xc0] sm:$0xff]  ;;  %v514_v19 = vld [vmem:[%s2429_s2 + $0xb8] sm:$0xff]  ;;  %v1978_v23 = vstv %s1492_s17  ;;  %441 = vst.msk [vmem:[#allocation2 + $0x10] sm:$0xff] %vm438_vm0, %v1827_v7  ;;  %1640 = vmatprep.mubr.msk.f32.mxu1 %vm1828_vm1, %v1827_v7  ;;  %s2377_s25 = scalar_lea.vmem %s2436_s9, %s1957_s16 }
  0x11   : > { %1528 = vmatprep.subr.mxu0 %v520_v5  ;;  %v466_v15 = vld [vmem:[%s1936_s21 + $0x8] sm:$0xff]  ;;  %v499_v18 = vld [vmem:[%s2429_s2 + $0x40] sm:$0xff]  ;;  %v498_v20 = vld [vmem:[%s2429_s2 + $0x38] sm:$0xff]  ;;  %442 = vst.msk [vmem:[#allocation2 + $0x18] sm:$0xff] %vm438_vm0, %v1827_v7 }
  0x12   : > { %1529 = vmatpush3.msra.mxu0 %v504_v6  ;;  %v500_v16 = vld [vmem:[%s2429_s2 + $0x48] sm:$0xff]  ;;  %587 = vmatprep.mubr.f32.mxu0 %v466_v15  ;;  %v513_v21 = vld [vmem:[%s2429_s2 + $0xb0] sm:$0xff]  ;;  %v698_v26 = vld [vmem:[%s1973_s27] sm:$0xff]  ;;  %443 = vst.msk [vmem:[#allocation2 + $0x20] sm:$0xff] %vm438_vm0, %v1827_v7 }
  0x13   : > { %1530 = vmatprep.subr.mxu0 %v519_v8  ;;  %v497_v22 = vld [vmem:[%s2429_s2 + $0x30] sm:$0xff]  ;;  %v512_v24 = vld [vmem:[%s2429_s2 + $0xa8] sm:$0xff]  ;;  %v511_v28 = vld [vmem:[%s2429_s2 + $0xa0] sm:$0xff]  ;;  %v712_v29 = vmul.f32 %v1978_v23, %v698_v26  ;;  %444 = vst.msk [vmem:[#allocation2 + $0x28] sm:$0xff] %vm438_vm0, %v1827_v7 }
  0x14   : > { %1531 = vmatpush3.msra.mxu0 %v503_v9  ;;  %v496_v25 = vld [vmem:[%s2429_s2 + $0x28] sm:$0xff]  ;;  %v700_v30 = vld [vmem:[%s1973_s27 + $0x10] sm:$0xff]  ;;  %v495_v31 = vld [vmem:[%s2429_s2 + $0x20] sm:$0xff]  ;;  %445 = vst.msk [vmem:[#allocation2 + $0x30] sm:$0xff] %vm438_vm0, %v1827_v7 }
  0x15   : > { %1532 = vmatprep.subr.mxu0 %v518_v10  ;;  %v699_v27 = vld [vmem:[%s1973_s27 + $0x8] sm:$0xff]  ;;  %v714_v32 = vmul.f32 %v1978_v23, %v700_v30  ;;  %v701_v33 = vld [vmem:[%s1973_s27 + $0x18] sm:$0xff]  ;;  %740 = vperm.xlu0 %1748, %v712_v29   ;;  %v702_v37 = vld [vmem:[%s1973_s27 + $0x20] sm:$0xff]  ;;  %446 = vst.msk [vmem:[#allocation2 + $0x38] sm:$0xff] %vm438_vm0, %v1827_v7 }
  0x16   : > { %1533 = vmatpush3.msra.mxu0 %v502_v11  ;;  %v510_v34 = vld [vmem:[%s2429_s2 + $0x98] sm:$0xff]  ;;  %v713_v35 = vmul.f32 %v1978_v23, %v699_v27  ;;  %v715_v38 = vmul.f32 %v1978_v23, %v701_v33  ;;  %v830_v39 = vld [vmem:[%s2432_s5 + $0x8] sm:$0xff]  ;;  %v509_v40 = vld [vmem:[%s2429_s2 + $0x90] sm:$0xff]  ;;  %v716_v44 = vmul.f32 %v1978_v23, %v702_v37  ;;  %447 = vst.msk [vmem:[#allocation2 + $0x40] sm:$0xff] %vm438_vm0, %v1827_v7 }
  0x17   : > { %1534 = vmatprep.subr.mxu0 %v517_v12  ;;  %v494_v36 = vld [vmem:[%s2429_s2 + $0x18] sm:$0xff]  ;;  %750 = vperm.xlu1 %1749, %v714_v32   ;;  %v703_v41 = vld [vmem:[%s1973_s27 + $0x28] sm:$0xff]  ;;  %v493_v42 = vld [vmem:[%s2429_s2 + $0x10] sm:$0xff]  ;;  %448 = vst.msk [vmem:[#allocation2 + $0x48] sm:$0xff] %vm438_vm0, %v1827_v7 }
  0x18   : > { %1535 = vmatpush3.msra.mxu0 %v501_v13  ;;  %1719 = vmatpush3.msra.mxu1 %v830_v39  ;;  %v508_v43 = vld [vmem:[%s2429_s2 + $0x88] sm:$0xff]  ;;  %v704_v46 = vld [vmem:[%s1973_s27 + $0x30] sm:$0xff]  ;;  %v717_v47 = vmul.f32 %v1978_v23, %v703_v41  ;;  %v829_v48 = vld [vmem:[%s2432_s5] sm:$0xff]  ;;  %449 = vst.msk [vmem:[#allocation2 + $0x50] sm:$0xff] %vm438_vm0, %v1827_v7 }
  0x19   : > { %1536 = vmatprep.subr.mxu0 %v516_v14  ;;  %1718 = vmatprep.subr.mxu1 %v1827_v7  ;;  %v492_v45 = vld [vmem:[%s2429_s2 + $0x8] sm:$0xff]  ;;  %v507_v49 = vld [vmem:[%s2429_s2 + $0x80] sm:$0xff]  ;;  %v705_v50 = vld [vmem:[%s1973_s27 + $0x38] sm:$0xff]  ;;  %v718_v53 = vmul.f32 %v1978_v23, %v704_v46  ;;  %450 = vst.msk [vmem:[#allocation2 + $0x58] sm:$0xff] %vm438_vm0, %v1827_v7 }
  0x1a   : > { %1537 = vmatpush3.msra.mxu0 %v500_v16  ;;  %745 = vperm.xlu0 %1748, %v713_v35   ;;  %v491_v51 = vld [vmem:[%s2429_s2] sm:$0xff]  ;;  %v468_v54 = vld [vmem:[%s1936_s21 + $0x18] sm:$0xff]  ;;  %v719_v56 = vmul.f32 %v1978_v23, %v705_v50  ;;  %v707_v57 = vld [vmem:[%s1973_s27 + $0x48] sm:$0xff]  ;;  %451 = vst.msk [vmem:[#allocation2 + $0x60] sm:$0xff] %vm438_vm0, %v1827_v7 }
  0x1b   : > { %1538 = vmatprep.subr.mxu0 %v515_v17  ;;  %755 = vperm.xlu1 %1749, %v715_v38   ;;  %v465_v52 = vld [vmem:[%s1936_s21] sm:$0xff]  ;;  %v467_v58 = vld [vmem:[%s1936_s21 + $0x10] sm:$0xff]  ;;  %v470_v60 = vld [vmem:[%s1936_s21 + $0x28] sm:$0xff]  ;;  %v721_v62 = vmul.f32 %v1978_v23, %v707_v57 }
  0x1c   : > { %1539 = vmatpush3.msra.mxu0 %v499_v18  ;;  %1720 = vmatpush3.msra.mxu1 %v829_v48  ;;  %v706_v55 = vld [vmem:[%s1973_s27 + $0x40] sm:$0xff]  ;;  %v708_v61 = vld [vmem:[%s1973_s27 + $0x50] sm:$0xff]  ;;  %v709_v63 = vld [vmem:[%s1973_s27 + $0x58] sm:$0xff] }
  0x1d   : > { %1540 = vmatprep.subr.mxu0 %v514_v19  ;;  %1670 = vmatprep.subr.mxu1 %v1827_v7  ;;  %v720_v59 = vmul.f32 %v1978_v23, %v706_v55  ;;  %v469_v0 = vld [vmem:[%s1936_s21 + $0x20] sm:$0xff]  ;;  %v722_v1 = vmul.f32 %v1978_v23, %v708_v61  ;;  %v472_v2 = vld [vmem:[%s1936_s21 + $0x38] sm:$0xff]  ;;  %v723_v4 = vmul.f32 %v1978_v23, %v709_v63  ;;  %v471_v5 = vld [vmem:[%s1936_s21 + $0x30] sm:$0xff] }
  0x1e   : > { %1541 = vmatpush3.msra.mxu0 %v498_v20  ;;  %760 = vperm.xlu0 %1748, %v716_v44   ;;  %v710_v3 = vld [vmem:[%s1973_s27 + $0x60] sm:$0xff]  ;;  %v474_v8 = vld [vmem:[%s1936_s21 + $0x48] sm:$0xff]  ;;  %v476_v10 = vld [vmem:[%s1936_s21 + $0x58] sm:$0xff] }
  0x1f   : > { %1542 = vmatprep.subr.mxu0 %v513_v21  ;;  %765 = vperm.xlu1 %1749, %v717_v47   ;;  %v724_v6 = vmul.f32 %v1978_v23, %v710_v3  ;;  %v473_v9 = vld [vmem:[%s1936_s21 + $0x40] sm:$0xff]  ;;  %v475_v11 = vld [vmem:[%s1936_s21 + $0x50] sm:$0xff]  ;;  %v478_v12 = vld [vmem:[%s1936_s21 + $0x68] sm:$0xff] }
  0x20   : > { %1543 = vmatpush3.msra.mxu0 %v497_v22  ;;  %v477_v13 = vld [vmem:[%s1936_s21 + $0x60] sm:$0xff]  ;;  %v480_v14 = vld [vmem:[%s1936_s21 + $0x78] sm:$0xff]  ;;  %v479_v15 = vld [vmem:[%s1936_s21 + $0x70] sm:$0xff] }
  0x21   : > { %1544 = vmatprep.subr.mxu0 %v512_v24  ;;  %v482_v16 = vld [vmem:[%s1936_s21 + $0x88] sm:$0xff]  ;;  %v481_v17 = vld [vmem:[%s1936_s21 + $0x80] sm:$0xff]  ;;  %v484_v18 = vld [vmem:[%s1936_s21 + $0x98] sm:$0xff] }
  0x22   : > { %1545 = vmatpush3.msra.mxu0 %v496_v25  ;;  %770 = vperm.xlu0 %1748, %v718_v53   ;;  %v483_v19 = vld [vmem:[%s1936_s21 + $0x90] sm:$0xff]  ;;  %v486_v20 = vld [vmem:[%s1936_s21 + $0xa8] sm:$0xff]  ;;  %v485_v21 = vld [vmem:[%s1936_s21 + $0xa0] sm:$0xff] }
  0x23   : > { %1546 = vmatprep.subr.mxu0 %v511_v28  ;;  %775 = vperm.xlu1 %1749, %v719_v56   ;;  %v488_v22 = vld [vmem:[%s1936_s21 + $0xb8] sm:$0xff]  ;;  %v487_v23 = vld [vmem:[%s1936_s21 + $0xb0] sm:$0xff]  ;;  %v490_v24 = vld [vmem:[%s1936_s21 + $0xc8] sm:$0xff] }
  0x24   : > { %1547 = vmatpush3.msra.mxu0 %v495_v31  ;;  %v489_v25 = vld [vmem:[%s1936_s21 + $0xc0] sm:$0xff]  ;;  %v453_v32 = vld [vmem:[#allocation2 + $0x8] sm:$0xff]  ;;  %v455_v46 = vld [vmem:[#allocation2 + $0x18] sm:$0xff] }
  0x25   : > { %1548 = vmatprep.subr.mxu0 %v510_v34  ;;  %v452_v27 = vld [vmem:[#allocation2] sm:$0xff] }
  0x26   : > { %1549 = vmatpush3.msra.mxu0 %v494_v36  ;;  %780 = vperm.xlu0 %1748, %v720_v59   ;;  %v725_v35 = vld [vmem:[%s2111_s26] sm:$0xff] }
  0x27   : > { %1550 = vmatprep.subr.mxu0 %v509_v40  ;;  %785 = vperm.xlu1 %1749, %v721_v62   ;;  %v456_v57 = vld [vmem:[#allocation2 + $0x20] sm:$0xff] }
  0x28   : > { %1551 = vmatpush3.msra.mxu0 %v493_v42 }
  0x29   : > { %1552 = vmatprep.subr.mxu0 %v508_v43 }
  0x2a   : > { %1553 = vmatpush3.msra.mxu0 %v492_v45  ;;  %790 = vperm.xlu0 %1748, %v722_v1   ;;  %v726_v45 = vld [vmem:[%s2111_s26 + $0x8] sm:$0xff]  ;;  %v728_v1 = vld [vmem:[%s2111_s26 + $0x18] sm:$0xff] }
  0x2b   : > { %1554 = vmatprep.subr.mxu0 %v507_v49  ;;  %795 = vperm.xlu1 %1749, %v723_v4  }
  0x2c   : > { %1555 = vmatpush3.msra.mxu0 %v491_v51 }
  0x2d   : > { %588 = vmatmul.mubr.f32.vlgmr.msra.gmra.mxu0 %v465_v52  ;;  %1627 = vmatprep.subr.mxu0 %v1827_v7  ;;  %v727_v52 = vld [vmem:[%s2111_s26 + $0x10] sm:$0xff] }
  0x2e   : > { %592 = vmatprep.mubr.f32.mxu0 %v468_v54  ;;  %1628 = vmatpush3.msra.mxu0 %v830_v39  ;;  %v454_v39 = vld [vmem:[#allocation2 + $0x10] sm:$0xff] }
  0x2f   : > { %1629 = vmatprep.subr.mxu0 %v1827_v7  ;;  %800 = vperm.xlu0 %1748, %v724_v6  }
  0x30   : > { %1630 = vmatpush3.msra.mxu0 %v829_v48 }
  0x31   : > { %593 = vmatmul.mubr.f32.gmra.mxu0 %v467_v58 }
  0x32   : > { %597 = vmatprep.mubr.f32.mxu0 %v470_v60 }
  0x35   : > { %598 = vmatmul.mubr.f32.gmra.mxu0 %v469_v0 }
  0x36   : > { %602 = vmatprep.mubr.f32.mxu0 %v472_v2  ;;  %v457_v2 = vld [vmem:[#allocation2 + $0x28] sm:$0xff] }
  0x39   : > { %603 = vmatmul.mubr.f32.gmra.mxu0 %v471_v5 }
  0x3a   : > { %607 = vmatprep.mubr.f32.mxu0 %v474_v8 }
  0x3d   : > { %608 = vmatmul.mubr.f32.gmra.mxu0 %v473_v9 }
  0x3e   : > { %612 = vmatprep.mubr.f32.mxu0 %v476_v10 }
  0x41   : > { %613 = vmatmul.mubr.f32.gmra.mxu0 %v475_v11 }
  0x42   : > { %617 = vmatprep.mubr.f32.mxu0 %v478_v12  ;;  %v729_v12 = vld [vmem:[%s2111_s26 + $0x20] sm:$0xff] }
  0x45   : > { %618 = vmatmul.mubr.f32.gmra.mxu0 %v477_v13  ;;  %v458_v13 = vld [vmem:[#allocation2 + $0x30] sm:$0xff] }
  0x46   : > { %622 = vmatprep.mubr.f32.mxu0 %v480_v14 }
  0x49   : > { %623 = vmatmul.mubr.f32.gmra.mxu0 %v479_v15 }
  0x4a   : > { %627 = vmatprep.mubr.f32.mxu0 %v482_v16 }
  0x4d   : > { %628 = vmatmul.mubr.f32.gmra.mxu0 %v481_v17 }
  0x4e   : > { %632 = vmatprep.mubr.f32.mxu0 %v484_v18  ;;  %v1023_v18 = vld [vmem:[%s2434_s7 + $0x18] sm:$0xff] }
  0x51   : > { %633 = vmatmul.mubr.f32.gmra.mxu0 %v483_v19 }
  0x52   : > { %637 = vmatprep.mubr.f32.mxu0 %v486_v20 }
  0x55   : > { %638 = vmatmul.mubr.f32.gmra.mxu0 %v485_v21 }
  0x56   : > { %642 = vmatprep.mubr.f32.mxu0 %v488_v22 }
  0x59   : > { %643 = vmatmul.mubr.f32.gmra.mxu0 %v487_v23  ;;  %v1022_v23 = vld [vmem:[%s2434_s7 + $0x10] sm:$0xff] }
  0x5a   : > { %647 = vmatprep.mubr.f32.mxu0 %v490_v24  ;;  %v730_v24 = vld [vmem:[%s2111_s26 + $0x28] sm:$0xff] }
  0x5d   : > { %648 = vmatmul.mubr.f32.gmra.mxu0 %v489_v25  ;;  %v459_v25 = vld [vmem:[#allocation2 + $0x38] sm:$0xff] }
  0x5e   : > { %1631 = vmatprep.mubr.msk.f32.mxu0 %vm1828_vm1, %v1827_v7 }
  0x90   : > { %v741_v38 = vpop.permute.xlu0 %740 }
  0x91   : > { %v803_v41 = vmul.f32 %v741_v38, %v725_v35  ;;  %v1020_v35 = vld [vmem:[%s2434_s7] sm:$0xff] }
  0x92   : > { %v751_v56 = vpop.permute.xlu1 %750 }
  0x93   : > { %v805_v60 = vmul.f32 %v751_v56, %v727_v52  ;;  %v733_v56 = vld [vmem:[%s2111_s26 + $0x40] sm:$0xff] }
  0x95   : > { %v746_v51 = vpop.permute.xlu0 %745 }
  0x96   : > { %v804_v54 = vmul.f32 %v746_v51, %v726_v45  ;;  %v756_v8 = vpop.permute.xlu1 %755 }
  0x97   : > { %v806_v10 = vmul.f32 %v756_v8, %v728_v1 }
  0x99   : > { %v761_v19 = vpop.permute.xlu0 %760 }
  0x9a   : > { %v807_v21 = vmul.f32 %v761_v19, %v729_v12 }
  0xed   : > { %v1556_v26 = vpop.f32.mrf.mxu0 }
  0xef   : > { %v1557_v28 = vpop.f32.mrf.mxu0 }
  0xf0   : > { %v1558_v29 = vadd.f32 %v1557_v28, %v1556_v26 }
  0xf1   : > { %v1559_v30 = vpop.f32.mrf.mxu0 }
  0xf2   : > { %v653_v31 = vadd.f32 %v1558_v29, %v452_v27 }
  0xf3   : > { %v1560_v33 = vpop.f32.mrf.mxu0 }
  0xf4   : > { %667 = vst.msk [vmem:[#allocation2] sm:$0xff] %vm438_vm0, %v653_v31  ;;  %v1561_v34 = vadd.f32 %v1560_v33, %v1559_v30  ;;  %v1021_v30 = vld [vmem:[%s2434_s7 + $0x8] sm:$0xff]  ;;  %v766_v31 = vpop.permute.xlu1 %765 }
  0xf5   : > { %v1562_v36 = vpop.f32.mrf.mxu0  ;;  %v808_v33 = vmul.f32 %v766_v31, %v730_v24 }
  0xf6   : > { %v654_v37 = vadd.f32 %v1561_v34, %v453_v32 }
  0xf7   : > { %v1563_v40 = vpop.f32.mrf.mxu0 }
  0xf8   : > { %668 = vst.msk [vmem:[#allocation2 + $0x8] sm:$0xff] %vm438_vm0, %v654_v37  ;;  %v1564_v42 = vadd.f32 %v1563_v40, %v1562_v36  ;;  %v731_v36 = vld [vmem:[%s2111_s26 + $0x30] sm:$0xff]  ;;  %v460_v37 = vld [vmem:[#allocation2 + $0x40] sm:$0xff]  ;;  %v776_v52 = vpop.permute.xlu1 %775 }
  0xf9   : > { %v1565_v43 = vpop.f32.mrf.mxu0 }
  0xfa   : > { %v655_v44 = vadd.f32 %v1564_v42, %v454_v39  ;;  %v771_v42 = vpop.permute.xlu0 %770 }
  0xfb   : > { %v1566_v47 = vpop.f32.mrf.mxu0  ;;  %v684_v48 = vld [vmem:[#allocation2] sm:$0xff] }
  0xfc   : > { %669 = vst.msk [vmem:[#allocation2 + $0x10] sm:$0xff] %vm438_vm0, %v655_v44  ;;  %v1567_v49 = vadd.f32 %v1566_v47, %v1565_v43  ;;  %v816_v50 = vadd.f32 %v803_v41, %v684_v48  ;;  %v809_v44 = vmul.f32 %v771_v42, %v731_v36  ;;  %v461_v47 = vld [vmem:[#allocation2 + $0x48] sm:$0xff] }
  0xfd   : > { %v1568_v53 = vpop.f32.mrf.mxu0 }
  0xfe   : > { %v656_v55 = vadd.f32 %v1567_v49, %v455_v46  ;;  %1632 = vmatmul.mubr.msk.f32.vlgmr.msra.gmra.mxu0 %vm438_vm0, %v816_v50  ;;  %v732_v46 = vld [vmem:[%s2111_s26 + $0x38] sm:$0xff] }
  0xff   : > { %v1569_v58 = vpop.f32.mrf.mxu0  ;;  %1634 = vmatprep.mubr.msk.f32.mxu0 %vm1828_vm1, %v1827_v7  ;;  %v685_v59 = vld [vmem:[#allocation2 + $0x8] sm:$0xff] }
 0x100   : > { %670 = vst.msk [vmem:[#allocation2 + $0x18] sm:$0xff] %vm438_vm0, %v656_v55  ;;  %v1570_v61 = vadd.f32 %v1569_v58, %v1568_v53  ;;  %v817_v62 = vadd.f32 %v804_v54, %v685_v59  ;;  %v810_v54 = vmul.f32 %v776_v52, %v732_v46 }
 0x101   : > { %v1571_v63 = vpop.f32.mrf.mxu0 }
 0x102   : > { %v657_v0 = vadd.f32 %v1570_v61, %v456_v57  ;;  %1635 = vmatmul.mubr.msk.f32.gmra.mxu0 %vm438_vm0, %v817_v62  ;;  %v462_v57 = vld [vmem:[#allocation2 + $0x50] sm:$0xff]  ;;  %v781_v62 = vpop.permute.xlu0 %780 }
 0x103   : > { %v1572_v3 = vpop.f32.mrf.mxu0  ;;  %1637 = vmatprep.mubr.msk.f32.mxu0 %vm1828_vm1, %v1827_v7  ;;  %v686_v4 = vld [vmem:[#allocation2 + $0x10] sm:$0xff] }
 0x104   : > { %671 = vst.msk [vmem:[#allocation2 + $0x20] sm:$0xff] %vm438_vm0, %v657_v0  ;;  %v1573_v5 = vadd.f32 %v1572_v3, %v1571_v63  ;;  %v818_v6 = vadd.f32 %v805_v60, %v686_v4  ;;  %v811_v0 = vmul.f32 %v781_v62, %v733_v56  ;;  %v463_v3 = vld [vmem:[#allocation2 + $0x58] sm:$0xff] }
 0x105   : > { %v1574_v9 = vpop.f32.mrf.mxu0 }
 0x106   : > { %v658_v11 = vadd.f32 %v1573_v5, %v457_v2  ;;  %1638 = vmatmul.mubr.msk.f32.gmra.mxu0 %vm438_vm0, %v818_v6  ;;  %v734_v2 = vld [vmem:[%s2111_s26 + $0x48] sm:$0xff]  ;;  %v791_v19 = vpop.permute.xlu0 %790 }
 0x107   : > { %v1575_v14 = vpop.f32.mrf.mxu0  ;;  %v687_v15 = vld [vmem:[#allocation2 + $0x18] sm:$0xff] }
 0x108   : > { %672 = vst.msk [vmem:[#allocation2 + $0x28] sm:$0xff] %vm438_vm0, %v658_v11  ;;  %v1576_v16 = vadd.f32 %v1575_v14, %v1574_v9  ;;  %v819_v17 = vadd.f32 %v806_v10, %v687_v15  ;;  %v786_v9 = vpop.permute.xlu1 %785  ;;  %v464_v14 = vld [vmem:[#allocation2 + $0x60] sm:$0xff] }
 0x109   : > { %v1577_v20 = vpop.f32.mrf.mxu0  ;;  %v812_v11 = vmul.f32 %v786_v9, %v734_v2 }
 0x10a   : > { %v659_v22 = vadd.f32 %v1576_v16, %v458_v13  ;;  %1641 = vmatmul.mubr.msk.f32.vlgmr.msra.gmra.mxu1 %vm438_vm0, %v819_v17  ;;  %v735_v13 = vld [vmem:[%s2111_s26 + $0x50] sm:$0xff] }
 0x10b   : > { %v1578_v26 = vpop.f32.mrf.mxu0  ;;  %1643 = vmatprep.mubr.msk.f32.mxu1 %vm1828_vm1, %v1827_v7  ;;  %v688_v27 = vld [vmem:[#allocation2 + $0x20] sm:$0xff]  ;;  %1671 = vmatpush3.msra.mxu1 %v1023_v18 }
 0x10c   : > { %673 = vst.msk [vmem:[#allocation2 + $0x30] sm:$0xff] %vm438_vm0, %v659_v22  ;;  %v1579_v28 = vadd.f32 %v1578_v26, %v1577_v20  ;;  %v820_v29 = vadd.f32 %v807_v21, %v688_v27  ;;  %1672 = vmatprep.subr.mxu1 %v1827_v7  ;;  %v813_v20 = vmul.f32 %v791_v19, %v735_v13  ;;  %v796_v22 = vpop.permute.xlu1 %795  ;;  %v801_v27 = vpop.permute.xlu0 %800 }
 0x10d   : > { %v1580_v32 = vpop.f32.mrf.mxu0  ;;  %1673 = vmatpush3.msra.mxu1 %v1022_v23  ;;  %v736_v23 = vld [vmem:[%s2111_s26 + $0x58] sm:$0xff] }
 0x10e   : > { %v660_v34 = vadd.f32 %v1579_v28, %v459_v25  ;;  %1644 = vmatmul.mubr.msk.f32.gmra.mxu1 %vm438_vm0, %v820_v29  ;;  %1674 = vmatprep.subr.mxu1 %v1827_v7  ;;  %v814_v26 = vmul.f32 %v796_v22, %v736_v23  ;;  %v737_v28 = vld [vmem:[%s2111_s26 + $0x60] sm:$0xff] }
 0x10f   : > { %v1581_v38 = vpop.f32.mrf.mxu0  ;;  %1646 = vmatprep.mubr.msk.f32.mxu1 %vm1828_vm1, %v1827_v7  ;;  %v689_v39 = vld [vmem:[#allocation2 + $0x28] sm:$0xff]  ;;  %1675 = vmatpush3.msra.mxu1 %v1021_v30  ;;  %v815_v31 = vmul.f32 %v801_v27, %v737_v28 }
 0x110   : > { %674 = vst.msk [vmem:[#allocation2 + $0x38] sm:$0xff] %vm438_vm0, %v660_v34  ;;  %v1582_v40 = vadd.f32 %v1581_v38, %v1580_v32  ;;  %v821_v41 = vadd.f32 %v808_v33, %v689_v39  ;;  %1676 = vmatprep.subr.mxu1 %v1827_v7  ;;  %v2194_v34 = vld [vmem:[%s2433_s6] ss:$0 sm:$0xff] }
 0x111   : > { %v1583_v43 = vpop.f32.mrf.mxu0  ;;  %1677 = vmatpush3.msra.mxu1 %v1020_v35 }
 0x112   : > { %v661_v45 = vadd.f32 %v1582_v40, %v460_v37  ;;  %1647 = vmatmul.mubr.msk.f32.gmra.mxu1 %vm438_vm0, %v821_v41 }
 0x113   : > { %v1584_v48 = vpop.f32.mrf.mxu0  ;;  %1649 = vmatprep.mubr.msk.f32.mxu1 %vm1828_vm1, %v1827_v7  ;;  %v690_v49 = vld [vmem:[#allocation2 + $0x30] sm:$0xff] }
 0x114   : > { %675 = vst.msk [vmem:[#allocation2 + $0x40] sm:$0xff] %vm438_vm0, %v661_v45  ;;  %v1585_v50 = vadd.f32 %v1584_v48, %v1583_v43  ;;  %v822_v51 = vadd.f32 %v809_v44, %v690_v49 }
 0x115   : > { %v1586_v53 = vpop.f32.mrf.mxu0 }
 0x116   : > { %v662_v55 = vadd.f32 %v1585_v50, %v461_v47  ;;  %1650 = vmatmul.mubr.msk.f32.gmra.mxu1 %vm438_vm0, %v822_v51 }
 0x117   : > { %v1587_v58 = vpop.f32.mrf.mxu0  ;;  %1652 = vmatprep.mubr.msk.f32.mxu1 %vm1828_vm1, %v1827_v7  ;;  %v691_v59 = vld [vmem:[#allocation2 + $0x38] sm:$0xff] }
 0x118   : > { %676 = vst.msk [vmem:[#allocation2 + $0x48] sm:$0xff] %vm438_vm0, %v662_v55  ;;  %v1588_v60 = vadd.f32 %v1587_v58, %v1586_v53  ;;  %v823_v61 = vadd.f32 %v810_v54, %v691_v59 }
 0x119   : > { %v1589_v63 = vpop.f32.mrf.mxu0 }
 0x11a   : > { %v663_v1 = vadd.f32 %v1588_v60, %v462_v57  ;;  %1653 = vmatmul.mubr.msk.f32.gmra.mxu1 %vm438_vm0, %v823_v61 }
 0x11b   : > { %v1590_v4 = vpop.f32.mrf.mxu0  ;;  %1655 = vmatprep.mubr.msk.f32.mxu1 %vm1828_vm1, %v1827_v7  ;;  %v692_v5 = vld [vmem:[#allocation2 + $0x40] sm:$0xff] }
 0x11c   : > { %677 = vst.msk [vmem:[#allocation2 + $0x50] sm:$0xff] %vm438_vm0, %v663_v1  ;;  %v1591_v6 = vadd.f32 %v1590_v4, %v1589_v63  ;;  %v824_v8 = vadd.f32 %v811_v0, %v692_v5 }
 0x11d   : > { %v1592_v10 = vpop.f32.mrf.mxu0 }
 0x11e   : > { %v664_v12 = vadd.f32 %v1591_v6, %v463_v3  ;;  %1656 = vmatmul.mubr.msk.f32.gmra.mxu1 %vm438_vm0, %v824_v8 }
 0x11f   : > { %v1593_v15 = vpop.f32.mrf.mxu0  ;;  %1658 = vmatprep.mubr.msk.f32.mxu1 %vm1828_vm1, %v1827_v7  ;;  %v693_v16 = vld [vmem:[#allocation2 + $0x48] sm:$0xff] }
 0x120   : > { %678 = vst.msk [vmem:[#allocation2 + $0x58] sm:$0xff] %vm438_vm0, %v664_v12  ;;  %v1594_v17 = vadd.f32 %v1593_v15, %v1592_v10  ;;  %v825_v18 = vadd.f32 %v812_v11, %v693_v16 }
 0x122   : > { %v665_v21 = vadd.f32 %v1594_v17, %v464_v14  ;;  %1659 = vmatmul.mubr.msk.f32.gmra.mxu1 %vm438_vm0, %v825_v18 }
 0x123   : > { %1661 = vmatprep.mubr.msk.f32.mxu1 %vm1828_vm1, %v1827_v7  ;;  %v694_v24 = vld [vmem:[#allocation2 + $0x50] sm:$0xff] }
 0x124   : > { %679 = vst.msk [vmem:[#allocation2 + $0x60] sm:$0xff] %vm438_vm0, %v665_v21  ;;  %v826_v25 = vadd.f32 %v813_v20, %v694_v24  ;;  %v2249_v24 = vld [vmem:[%s2435_s8] ss:$0 sm:$0xff] }
 0x126   : > { %1662 = vmatmul.mubr.msk.f32.gmra.mxu1 %vm438_vm0, %v826_v25 }
 0x127   : > { %1664 = vmatprep.mubr.msk.f32.mxu1 %vm1828_vm1, %v1827_v7  ;;  %v695_v29 = vld [vmem:[#allocation2 + $0x58] sm:$0xff] }
 0x128   : > { %v827_v30 = vadd.f32 %v814_v26, %v695_v29 }
 0x12a   : > { %1665 = vmatmul.mubr.msk.f32.gmra.mxu1 %vm438_vm0, %v827_v30 }
 0x12b   : > { %1667 = vmatprep.mubr.msk.f32.mxu1 %vm1828_vm1, %v1827_v7  ;;  %v696_v32 = vld [vmem:[#allocation2 + $0x60] sm:$0xff] }
 0x12c   : > { %v828_v33 = vadd.f32 %v815_v31, %v696_v32 }
 0x12e   : > { %1668 = vmatmul.mubr.msk.f32.gmra.mxu1 %vm438_vm0, %v828_v33 }
 0x12f   : > { %1678 = vmatprep.mubr.msk.f32.mxu1 %vm1828_vm1, %v1827_v7 }
 0x1be   : > { %v943_v35 = vpop.f32.mrf.mxu0 }
 0x1bf   : > { %v944_v36 = vadd.f32 %v2194_v34, %v943_v35 }
 0x1c0   : > { %v1633_v37 = vpop.f32.mrf.mxu0 }
 0x1c1   : > { %v1007_v38 = vmax.f32 %v944_v36, 0.0 }
 0x1c2   : > { %v948_v39 = vpop.f32.mrf.mxu0 }
 0x1c3   : > { %v949_v40 = vadd.f32 %v2194_v34, %v948_v39  ;;  %1679 = vmatmul.mubr.msk.f32.vlgmr.msra.gmra.mxu1 %vm1031_vm2, %v1007_v38 }
 0x1c4   : > { %v1636_v41 = vpop.f32.mrf.mxu0  ;;  %1681 = vmatprep.mubr.msk.f32.mxu1 %vm1828_vm1, %v1827_v7 }
 0x1c5   : > { %v1008_v42 = vmax.f32 %v949_v40, 0.0 }
 0x1c6   : > { %v953_v43 = vpop.f32.mrf.mxu0 }
 0x1c7   : > { %v954_v44 = vadd.f32 %v2194_v34, %v953_v43  ;;  %1682 = vmatmul.mubr.msk.f32.gmra.mxu1 %vm1031_vm2, %v1008_v42 }
 0x1c8   : > { %v1639_v45 = vpop.f32.mrf.mxu0  ;;  %1684 = vmatprep.mubr.msk.f32.mxu1 %vm1828_vm1, %v1827_v7 }
 0x1c9   : > { %v1009_v46 = vmax.f32 %v954_v44, 0.0 }
 0x1ca   : > { %v958_v47 = vpop.f32.mrf.mxu1 }
 0x1cb   : > { %v959_v48 = vadd.f32 %v2194_v34, %v958_v47  ;;  %1685 = vmatmul.mubr.msk.f32.gmra.mxu1 %vm1031_vm2, %v1009_v46 }
 0x1cc   : > { %v1642_v49 = vpop.f32.mrf.mxu1  ;;  %1687 = vmatprep.mubr.msk.f32.mxu1 %vm1828_vm1, %v1827_v7 }
 0x1cd   : > { %v1010_v50 = vmax.f32 %v959_v48, 0.0 }
 0x1ce   : > { %v963_v51 = vpop.f32.mrf.mxu1 }
 0x1cf   : > { %v964_v52 = vadd.f32 %v2194_v34, %v963_v51  ;;  %1688 = vmatmul.mubr.msk.f32.gmra.mxu1 %vm1031_vm2, %v1010_v50 }
 0x1d0   : > { %v1645_v53 = vpop.f32.mrf.mxu1  ;;  %1690 = vmatprep.mubr.msk.f32.mxu1 %vm1828_vm1, %v1827_v7 }
 0x1d1   : > { %v1011_v54 = vmax.f32 %v964_v52, 0.0 }
 0x1d2   : > { %v968_v55 = vpop.f32.mrf.mxu1 }
 0x1d3   : > { %v969_v56 = vadd.f32 %v2194_v34, %v968_v55  ;;  %1691 = vmatmul.mubr.msk.f32.gmra.mxu1 %vm1031_vm2, %v1011_v54 }
 0x1d4   : > { %v1648_v57 = vpop.f32.mrf.mxu1  ;;  %1693 = vmatprep.mubr.msk.f32.mxu1 %vm1828_vm1, %v1827_v7 }
 0x1d5   : > { %v1012_v58 = vmax.f32 %v969_v56, 0.0 }
 0x1d6   : > { %v973_v59 = vpop.f32.mrf.mxu1 }
 0x1d7   : > { %v974_v60 = vadd.f32 %v2194_v34, %v973_v59  ;;  %1694 = vmatmul.mubr.msk.f32.gmra.mxu1 %vm1031_vm2, %v1012_v58 }
 0x1d8   : > { %v1651_v61 = vpop.f32.mrf.mxu1  ;;  %1696 = vmatprep.mubr.msk.f32.mxu1 %vm1828_vm1, %v1827_v7 }
 0x1d9   : > { %v1013_v62 = vmax.f32 %v974_v60, 0.0 }
 0x1da   : > { %v978_v63 = vpop.f32.mrf.mxu1 }
 0x1db   : > { %v979_v0 = vadd.f32 %v2194_v34, %v978_v63  ;;  %1697 = vmatmul.mubr.msk.f32.gmra.mxu1 %vm1031_vm2, %v1013_v62 }
 0x1dc   : > { %v1654_v1 = vpop.f32.mrf.mxu1  ;;  %1699 = vmatprep.mubr.msk.f32.mxu1 %vm1828_vm1, %v1827_v7 }
 0x1dd   : > { %v1014_v2 = vmax.f32 %v979_v0, 0.0 }
 0x1de   : > { %v983_v3 = vpop.f32.mrf.mxu1 }
 0x1df   : > { %v984_v4 = vadd.f32 %v2194_v34, %v983_v3  ;;  %1700 = vmatmul.mubr.msk.f32.gmra.mxu1 %vm1031_vm2, %v1014_v2 }
 0x1e0   : > { %v1657_v5 = vpop.f32.mrf.mxu1  ;;  %1702 = vmatprep.mubr.msk.f32.mxu1 %vm1828_vm1, %v1827_v7 }
 0x1e1   : > { %v1015_v6 = vmax.f32 %v984_v4, 0.0 }
 0x1e2   : > { %v988_v8 = vpop.f32.mrf.mxu1 }
 0x1e3   : > { %v989_v9 = vadd.f32 %v2194_v34, %v988_v8  ;;  %1703 = vmatmul.mubr.msk.f32.gmra.mxu1 %vm1031_vm2, %v1015_v6 }
 0x1e4   : > { %v1660_v10 = vpop.f32.mrf.mxu1  ;;  %1705 = vmatprep.mubr.msk.f32.mxu1 %vm1828_vm1, %v1827_v7 }
 0x1e5   : > { %v1016_v11 = vmax.f32 %v989_v9, 0.0 }
 0x1e6   : > { %v993_v12 = vpop.f32.mrf.mxu1 }
 0x1e7   : > { %v994_v13 = vadd.f32 %v2194_v34, %v993_v12  ;;  %1706 = vmatmul.mubr.msk.f32.gmra.mxu1 %vm1031_vm2, %v1016_v11 }
 0x1e8   : > { %v1663_v14 = vpop.f32.mrf.mxu1  ;;  %1708 = vmatprep.mubr.msk.f32.mxu1 %vm1828_vm1, %v1827_v7 }
 0x1e9   : > { %v1017_v15 = vmax.f32 %v994_v13, 0.0 }
 0x1ea   : > { %v998_v16 = vpop.f32.mrf.mxu1 }
 0x1eb   : > { %v999_v17 = vadd.f32 %v2194_v34, %v998_v16  ;;  %1709 = vmatmul.mubr.msk.f32.gmra.mxu1 %vm1031_vm2, %v1017_v15 }
 0x1ec   : > { %v1666_v18 = vpop.f32.mrf.mxu1  ;;  %1711 = vmatprep.mubr.msk.f32.mxu1 %vm1828_vm1, %v1827_v7 }
 0x1ed   : > { %v1018_v19 = vmax.f32 %v999_v17, 0.0 }
 0x1ee   : > { %v1003_v20 = vpop.f32.mrf.mxu1 }
 0x1ef   : > { %v1004_v21 = vadd.f32 %v2194_v34, %v1003_v20  ;;  %1712 = vmatmul.mubr.msk.f32.gmra.mxu1 %vm1031_vm2, %v1018_v19 }
 0x1f0   : > { %v1669_v22 = vpop.f32.mrf.mxu1  ;;  %1714 = vmatprep.mubr.msk.f32.mxu1 %vm1828_vm1, %v1827_v7 }
 0x1f1   : > { %v1019_v23 = vmax.f32 %v1004_v21, 0.0 }
 0x1f3   : > { %1715 = vmatmul.mubr.msk.f32.gmra.mxu1 %vm1031_vm2, %v1019_v23 }
 0x283   : > { %v1137_v25 = vpop.f32.mrf.mxu1 }
 0x284   : > { %v2252_v26 = vadd.f32 %v2249_v24, %v1137_v25 }
 0x285   : > { %v1680_v27 = vpop.f32.mrf.mxu1 }
 0x286   : > { %v1202_v28 = vsel %vm1201_vm3, %v2252_v26, -inf }
 0x287   : > { %1203 = vmax.xlane.f32.xlu1 %v1202_v28  ;;  %v1142_v29 = vpop.f32.mrf.mxu1 }
 0x288   : > { %v2257_v7 = vadd.f32 %v2249_v24, %v1142_v29 }
 0x289   : > { %v1683_v30 = vpop.f32.mrf.mxu1 }
 0x28a   : > { %v1205_v31 = vsel %vm1201_vm3, %v2257_v7, -inf }
 0x28b   : > { %1206 = vmax.xlane.f32.xlu0 %v1205_v31  ;;  %v1147_v32 = vpop.f32.mrf.mxu1 }
 0x28c   : > { %v2262_v33 = vadd.f32 %v2249_v24, %v1147_v32 }
 0x28d   : > { %v1686_v34 = vpop.f32.mrf.mxu1 }
 0x28e   : > { %v1208_v35 = vsel %vm1201_vm3, %v2262_v33, -inf }
 0x28f   : > { %1209 = vmax.xlane.f32.xlu0 %v1208_v35  ;;  %v1152_v36 = vpop.f32.mrf.mxu1 }
 0x290   : > { %v1153_v37 = vadd.f32 %v2249_v24, %v1152_v36 }
 0x291   : > { %v1689_v38 = vpop.f32.mrf.mxu1 }
 0x292   : > { %v1211_v39 = vsel %vm1201_vm3, %v1153_v37, -inf }
 0x293   : > { %1212 = vmax.xlane.f32.xlu1 %v1211_v39  ;;  %v1157_v40 = vpop.f32.mrf.mxu1 }
 0x294   : > { %v1158_v41 = vadd.f32 %v2249_v24, %v1157_v40 }
 0x295   : > { %v1692_v42 = vpop.f32.mrf.mxu1 }
 0x296   : > { %v1214_v43 = vsel %vm1201_vm3, %v1158_v41, -inf }
 0x297   : > { %1215 = vmax.xlane.f32.xlu0 %v1214_v43  ;;  %v1162_v44 = vpop.f32.mrf.mxu1 }
 0x298   : > { %v2271_v45 = vadd.f32 %v2249_v24, %v1162_v44 }
 0x299   : > { %v1695_v46 = vpop.f32.mrf.mxu1 }
 0x29a   : > { %v1217_v47 = vsel %vm1201_vm3, %v2271_v45, -inf }
 0x29b   : > { %1218 = vmax.xlane.f32.xlu1 %v1217_v47  ;;  %v1167_v48 = vpop.f32.mrf.mxu1 }
 0x29c   : > { %v2276_v49 = vadd.f32 %v2249_v24, %v1167_v48 }
 0x29d   : > { %v1698_v50 = vpop.f32.mrf.mxu1 }
 0x29e   : > { %v1220_v51 = vsel %vm1201_vm3, %v2276_v49, -inf }
 0x29f   : > { %1221 = vmax.xlane.f32.xlu0 %v1220_v51  ;;  %v1172_v52 = vpop.f32.mrf.mxu1 }
 0x2a0   : > { %v2281_v53 = vadd.f32 %v2249_v24, %v1172_v52 }
 0x2a1   : > { %v1701_v54 = vpop.f32.mrf.mxu1 }
 0x2a2   : > { %v1223_v55 = vsel %vm1201_vm3, %v2281_v53, -inf }
 0x2a3   : > { %1224 = vmax.xlane.f32.xlu1 %v1223_v55  ;;  %v1177_v56 = vpop.f32.mrf.mxu1 }
 0x2a4   : > { %v2286_v57 = vadd.f32 %v2249_v24, %v1177_v56 }
 0x2a5   : > { %v1704_v58 = vpop.f32.mrf.mxu1 }
 0x2a6   : > { %v1226_v59 = vsel %vm1201_vm3, %v2286_v57, -inf }
 0x2a7   : > { %1227 = vmax.xlane.f32.xlu0 %v1226_v59  ;;  %v1182_v60 = vpop.f32.mrf.mxu1 }
 0x2a8   : > { %v2291_v61 = vadd.f32 %v2249_v24, %v1182_v60 }
 0x2a9   : > { %v1707_v62 = vpop.f32.mrf.mxu1 }
 0x2aa   : > { %v1229_v63 = vsel %vm1201_vm3, %v2291_v61, -inf }
 0x2ab   : > { %1230 = vmax.xlane.f32.xlu1 %v1229_v63  ;;  %v1187_v0 = vpop.f32.mrf.mxu1 }
 0x2ac   : > { %v2296_v1 = vadd.f32 %v2249_v24, %v1187_v0 }
 0x2ad   : > { %v1710_v2 = vpop.f32.mrf.mxu1 }
 0x2ae   : > { %v1232_v3 = vsel %vm1201_vm3, %v2296_v1, -inf }
 0x2af   : > { %1233 = vmax.xlane.f32.xlu0 %v1232_v3  ;;  %v1192_v4 = vpop.f32.mrf.mxu1 }
 0x2b0   : > { %v2301_v5 = vadd.f32 %v2249_v24, %v1192_v4 }
 0x2b1   : > { %v1713_v6 = vpop.f32.mrf.mxu1 }
 0x2b2   : > { %v1235_v8 = vsel %vm1201_vm3, %v2301_v5, -inf }
 0x2b3   : > { %1236 = vmax.xlane.f32.xlu1 %v1235_v8  ;;  %v1197_v9 = vpop.f32.mrf.mxu1 }
 0x2b4   : > { %v2306_v10 = vadd.f32 %v2249_v24, %v1197_v9 }
 0x2b5   : > { %v1716_v11 = vpop.f32.mrf.mxu1 }
 0x2b6   : > { %v1238_v12 = vsel %vm1201_vm3, %v2306_v10, -inf }
 0x2b7   : > { %1239 = vmax.xlane.f32.xlu0 %v1238_v12 }
 0x310   : > { %v1204_v13 = vpop.xlane.xlu1 %1203 }
 0x311   : > { %v2311_v14 = vsub.f32 %v2252_v26, %v1204_v13 }
 0x313   : > { %v1254_v15 = vmul.f32 1.442695, %v2311_v14 }
 0x314   : > { %v1207_v16 = vpop.xlane.xlu0 %1206 }
 0x315   : > { %1750 = vpow2.f32 %v1254_v15  ;;  %v2315_v17 = vsub.f32 %v2257_v7, %v1207_v16 }
 0x317   : > { %v1256_v18 = vmul.f32 1.442695, %v2315_v17 }
 0x318   : > { %v1210_v19 = vpop.xlane.xlu0 %1209 }
 0x319   : > { %1752 = vpow2.f32 %v1256_v18  ;;  %v2319_v20 = vsub.f32 %v2262_v33, %v1210_v19 }
 0x31b   : > { %v1258_v21 = vmul.f32 1.442695, %v2319_v20 }
 0x31c   : > { %v1213_v22 = vpop.xlane.xlu1 %1212 }
 0x31d   : > { %1754 = vpow2.f32 %v1258_v21  ;;  %v2322_v23 = vsub.f32 %v1153_v37, %v1213_v22 }
 0x31f   : > { %v1260_v24 = vmul.f32 1.442695, %v2322_v23 }
 0x320   : > { %v1216_v25 = vpop.xlane.xlu0 %1215 }
 0x321   : > { %1756 = vpow2.f32 %v1260_v24  ;;  %v2325_v26 = vsub.f32 %v1158_v41, %v1216_v25 }
 0x322   : > { %v1751_v27 = vpop.eup %1750 }
 0x323   : > { %v1262_v28 = vmul.f32 1.442695, %v2325_v26  ;;  %v1280_v29 = vsel %vm1201_vm3, %v1751_v27, 0.0 }
 0x324   : > { %v1219_v7 = vpop.xlane.xlu1 %1218  ;;  %1281 = vadd.xlane.f32.xlu1 %v1280_v29 }
 0x325   : > { %1758 = vpow2.f32 %v1262_v28  ;;  %v2330_v30 = vsub.f32 %v2271_v45, %v1219_v7 }
 0x326   : > { %v1753_v31 = vpop.eup %1752 }
 0x327   : > { %v1264_v32 = vmul.f32 1.442695, %v2330_v30  ;;  %v1283_v33 = vsel %vm1201_vm3, %v1753_v31, 0.0 }
 0x328   : > { %v1222_v34 = vpop.xlane.xlu0 %1221  ;;  %1284 = vadd.xlane.f32.xlu0 %v1283_v33 }
 0x329   : > { %1760 = vpow2.f32 %v1264_v32  ;;  %v2335_v35 = vsub.f32 %v2276_v49, %v1222_v34 }
 0x32a   : > { %v1755_v36 = vpop.eup %1754 }
 0x32b   : > { %v1266_v37 = vmul.f32 1.442695, %v2335_v35  ;;  %v1286_v38 = vsel %vm1201_vm3, %v1755_v36, 0.0 }
 0x32c   : > { %v1225_v39 = vpop.xlane.xlu1 %1224  ;;  %1287 = vadd.xlane.f32.xlu1 %v1286_v38 }
 0x32d   : > { %1762 = vpow2.f32 %v1266_v37  ;;  %v2340_v40 = vsub.f32 %v2281_v53, %v1225_v39 }
 0x32e   : > { %v1757_v41 = vpop.eup %1756 }
 0x32f   : > { %v1268_v42 = vmul.f32 1.442695, %v2340_v40  ;;  %v1289_v43 = vsel %vm1201_vm3, %v1757_v41, 0.0 }
 0x330   : > { %v1228_v44 = vpop.xlane.xlu0 %1227  ;;  %1290 = vadd.xlane.f32.xlu0 %v1289_v43 }
 0x331   : > { %1764 = vpow2.f32 %v1268_v42  ;;  %v2345_v45 = vsub.f32 %v2286_v57, %v1228_v44 }
 0x332   : > { %v1759_v46 = vpop.eup %1758 }
 0x333   : > { %v1270_v47 = vmul.f32 1.442695, %v2345_v45  ;;  %v1292_v48 = vsel %vm1201_vm3, %v1759_v46, 0.0 }
 0x334   : > { %v1231_v49 = vpop.xlane.xlu1 %1230  ;;  %1293 = vadd.xlane.f32.xlu1 %v1292_v48 }
 0x335   : > { %1766 = vpow2.f32 %v1270_v47  ;;  %v2350_v50 = vsub.f32 %v2291_v61, %v1231_v49 }
 0x336   : > { %v1761_v51 = vpop.eup %1760 }
 0x337   : > { %v1272_v52 = vmul.f32 1.442695, %v2350_v50  ;;  %v1295_v53 = vsel %vm1201_vm3, %v1761_v51, 0.0 }
 0x338   : > { %v1234_v54 = vpop.xlane.xlu0 %1233  ;;  %1296 = vadd.xlane.f32.xlu0 %v1295_v53 }
 0x339   : > { %1768 = vpow2.f32 %v1272_v52  ;;  %v2355_v55 = vsub.f32 %v2296_v1, %v1234_v54 }
 0x33a   : > { %v1763_v56 = vpop.eup %1762 }
 0x33b   : > { %v1274_v57 = vmul.f32 1.442695, %v2355_v55  ;;  %v1298_v58 = vsel %vm1201_vm3, %v1763_v56, 0.0 }
 0x33c   : > { %1299 = vadd.xlane.f32.xlu1 %v1298_v58  ;;  %v1237_v59 = vpop.xlane.xlu1 %1236 }
 0x33d   : > { %1770 = vpow2.f32 %v1274_v57  ;;  %v2360_v60 = vsub.f32 %v2301_v5, %v1237_v59 }
 0x33e   : > { %v1765_v61 = vpop.eup %1764 }
 0x33f   : > { %v1276_v62 = vmul.f32 1.442695, %v2360_v60  ;;  %v1301_v63 = vsel %vm1201_vm3, %v1765_v61, 0.0 }
 0x340   : > { %1302 = vadd.xlane.f32.xlu0 %v1301_v63  ;;  %v1240_v0 = vpop.xlane.xlu0 %1239 }
 0x341   : > { %1772 = vpow2.f32 %v1276_v62  ;;  %v2365_v1 = vsub.f32 %v2306_v10, %v1240_v0 }
 0x342   : > { %v1767_v2 = vpop.eup %1766 }
 0x343   : > { %v1278_v3 = vmul.f32 1.442695, %v2365_v1  ;;  %v1304_v4 = vsel %vm1201_vm3, %v1767_v2, 0.0 }
 0x344   : > { %1305 = vadd.xlane.f32.xlu1 %v1304_v4 }
 0x345   : > { %1774 = vpow2.f32 %v1278_v3 }
 0x346   : > { %v1769_v5 = vpop.eup %1768 }
 0x347   : > { %v1307_v6 = vsel %vm1201_vm3, %v1769_v5, 0.0 }
 0x348   : > { %1308 = vadd.xlane.f32.xlu0 %v1307_v6 }
 0x34a   : > { %v1771_v8 = vpop.eup %1770 }
 0x34b   : > { %v1310_v9 = vsel %vm1201_vm3, %v1771_v8, 0.0 }
 0x34c   : > { %1311 = vadd.xlane.f32.xlu1 %v1310_v9 }
 0x34e   : > { %v1773_v11 = vpop.eup %1772 }
 0x34f   : > { %v1313_v10 = vsel %vm1201_vm3, %v1773_v11, 0.0 }
 0x350   : > { %1314 = vadd.xlane.f32.xlu0 %v1313_v10 }
 0x352   : > { %v1775_v12 = vpop.eup %1774 }
 0x353   : > { %v1316_v13 = vsel %vm1201_vm3, %v1775_v12, 0.0 }
 0x354   : > { %1317 = vadd.xlane.f32.xlu1 %v1316_v13 }
 0x3ad   : > { %v1282_v15 = vpop.xlane.xlu1 %1281 }
 0x3ae   : > { %1776 = vlog2.f32 %v1282_v15 }
 0x3b1   : > { %v1285_v16 = vpop.xlane.xlu0 %1284 }
 0x3b2   : > { %1778 = vlog2.f32 %v1285_v16 }
 0x3b5   : > { %v1288_v18 = vpop.xlane.xlu1 %1287 }
 0x3b6   : > { %1780 = vlog2.f32 %v1288_v18 }
 0x3b9   : > { %v1291_v19 = vpop.xlane.xlu0 %1290 }
 0x3ba   : > { %1782 = vlog2.f32 %v1291_v19 }
 0x3bb   : > { %v1777_v21 = vpop.eup %1776 }
 0x3bc   : > { %v1320_v22 = vmul.f32 0.6931472, %v1777_v21 }
 0x3bd   : > { %v1294_v24 = vpop.xlane.xlu1 %1293 }
 0x3be   : > { %v1345_v25 = vsub.f32 %v2311_v14, %v1320_v22  ;;  %1784 = vlog2.f32 %v1294_v24 }
 0x3bf   : > { %v1779_v27 = vpop.eup %1778 }
 0x3c0   : > { %1358 = vst.msk [vmem:[%s2377_s25] sm:$0xff] %vm1201_vm3, %v1345_v25  ;;  %v1322_v28 = vmul.f32 0.6931472, %v1779_v27 }
 0x3c1   : > { %v1297_v29 = vpop.xlane.xlu0 %1296 }
 0x3c2   : > { %v1346_v7 = vsub.f32 %v2315_v17, %v1322_v28  ;;  %1786 = vlog2.f32 %v1297_v29 }
 0x3c3   : > { %v1781_v31 = vpop.eup %1780 }
 0x3c4   : > { %1359 = vst.msk [vmem:[%s2377_s25 + $0x8] sm:$0xff] %vm1201_vm3, %v1346_v7  ;;  %v1324_v32 = vmul.f32 0.6931472, %v1781_v31 }
 0x3c5   : > { %v1300_v33 = vpop.xlane.xlu1 %1299 }
 0x3c6   : > { %v1347_v34 = vsub.f32 %v2319_v20, %v1324_v32  ;;  %1788 = vlog2.f32 %v1300_v33 }
 0x3c7   : > { %v1783_v14 = vpop.eup %1782 }
 0x3c8   : > { %1360 = vst.msk [vmem:[%s2377_s25 + $0x10] sm:$0xff] %vm1201_vm3, %v1347_v34  ;;  %v1326_v36 = vmul.f32 0.6931472, %v1783_v14 }
 0x3c9   : > { %v1303_v37 = vpop.xlane.xlu0 %1302 }
 0x3ca   : > { %v1348_v38 = vsub.f32 %v2322_v23, %v1326_v36  ;;  %1790 = vlog2.f32 %v1303_v37 }
 0x3cb   : > { %v1785_v17 = vpop.eup %1784 }
 0x3cc   : > { %1361 = vst.msk [vmem:[%s2377_s25 + $0x18] sm:$0xff] %vm1201_vm3, %v1348_v38  ;;  %v1328_v39 = vmul.f32 0.6931472, %v1785_v17 }
 0x3cd   : > { %v1306_v41 = vpop.xlane.xlu1 %1305 }
 0x3ce   : > { %v1349_v42 = vsub.f32 %v2325_v26, %v1328_v39  ;;  %1792 = vlog2.f32 %v1306_v41 }
 0x3cf   : > { %v1787_v20 = vpop.eup %1786 }
 0x3d0   : > { %1362 = vst.msk [vmem:[%s2377_s25 + $0x20] sm:$0xff] %vm1201_vm3, %v1349_v42  ;;  %v1330_v43 = vmul.f32 0.6931472, %v1787_v20 }
 0x3d1   : > { %v1309_v44 = vpop.xlane.xlu0 %1308 }
 0x3d2   : > { %v1350_v46 = vsub.f32 %v2330_v30, %v1330_v43  ;;  %1794 = vlog2.f32 %v1309_v44 }
 0x3d3   : > { %v1789_v23 = vpop.eup %1788 }
 0x3d4   : > { %1363 = vst.msk [vmem:[%s2377_s25 + $0x28] sm:$0xff] %vm1201_vm3, %v1350_v46  ;;  %v1332_v47 = vmul.f32 0.6931472, %v1789_v23 }
 0x3d5   : > { %v1312_v48 = vpop.xlane.xlu1 %1311 }
 0x3d6   : > { %v1351_v49 = vsub.f32 %v2335_v35, %v1332_v47  ;;  %1796 = vlog2.f32 %v1312_v48 }
 0x3d7   : > { %v1791_v26 = vpop.eup %1790 }
 0x3d8   : > { %1364 = vst.msk [vmem:[%s2377_s25 + $0x30] sm:$0xff] %vm1201_vm3, %v1351_v49  ;;  %v1334_v51 = vmul.f32 0.6931472, %v1791_v26 }
 0x3d9   : > { %v1315_v52 = vpop.xlane.xlu0 %1314 }
 0x3da   : > { %v1352_v53 = vsub.f32 %v2340_v40, %v1334_v51  ;;  %1798 = vlog2.f32 %v1315_v52 }
 0x3db   : > { %v1793_v30 = vpop.eup %1792 }
 0x3dc   : > { %1365 = vst.msk [vmem:[%s2377_s25 + $0x38] sm:$0xff] %vm1201_vm3, %v1352_v53  ;;  %v1336_v54 = vmul.f32 0.6931472, %v1793_v30 }
 0x3dd   : > { %v1318_v56 = vpop.xlane.xlu1 %1317 }
 0x3de   : > { %v1353_v57 = vsub.f32 %v2345_v45, %v1336_v54  ;;  %1800 = vlog2.f32 %v1318_v56 }
 0x3df   : > { %v1795_v35 = vpop.eup %1794 }
 0x3e0   : > { %1366 = vst.msk [vmem:[%s2377_s25 + $0x40] sm:$0xff] %vm1201_vm3, %v1353_v57  ;;  %v1338_v58 = vmul.f32 0.6931472, %v1795_v35 }
 0x3e2   : > { %v1354_v59 = vsub.f32 %v2350_v50, %v1338_v58 }
 0x3e3   : > { %v1797_v61 = vpop.eup %1796 }
 0x3e4   : > { %1367 = vst.msk [vmem:[%s2377_s25 + $0x48] sm:$0xff] %vm1201_vm3, %v1354_v59  ;;  %v1340_v40 = vmul.f32 0.6931472, %v1797_v61 }
 0x3e6   : > { %v1355_v62 = vsub.f32 %v2355_v55, %v1340_v40 }
 0x3e7   : > { %v1799_v63 = vpop.eup %1798 }
 0x3e8   : > { %1368 = vst.msk [vmem:[%s2377_s25 + $0x50] sm:$0xff] %vm1201_vm3, %v1355_v62  ;;  %v1342_v0 = vmul.f32 0.6931472, %v1799_v63 }
 0x3ea   : > { %v1356_v45 = vsub.f32 %v2360_v60, %v1342_v0 }
 0x3eb   : > { %v1801_v2 = vpop.eup %1800 }
 0x3ec   : > { %1369 = vst.msk [vmem:[%s2377_s25 + $0x58] sm:$0xff] %vm1201_vm3, %v1356_v45  ;;  %v1344_v3 = vmul.f32 0.6931472, %v1801_v2 }
 0x3ee   : > { %v1357_v4 = vsub.f32 %v2365_v1, %v1344_v3 }
 0x3f0   : > { %1370 = vst.msk [vmem:[%s2377_s25 + $0x60] sm:$0xff] %vm1201_vm3, %v1357_v4 }
 0x3f1 PF: > { %s20_s13 = sadd.s32 1, %s1824_s13   ;;  %s2437_s11 = smov %s1820_s12 }
 0x3f2   : > { %p17_p5 = scmp.ge.s32.totalorder %s20_s13, 4   ;;  %s2438_s12 = smov %s2440_s0 }
 0x3f4   :  { %19 = sbr.rel (!%p17_p5) target bundleno = 2 (0x2), region = 103 }

</bundles_post_ra>
